<compile_context>
chip_gen: v5e
topology: v5e:2x2
jax: 0.10.0
libtpu: 0.0.40
codegen_flags: <defaults>
</compile_context>

<pallas_src>
import functools

import jax
import jax.numpy as jnp
from jax import lax
from jax.experimental import pallas as pl
from jax.experimental.pallas import tpu as pltpu


SUB = 256        # lanes per inner sub-block (multiple of 128; matches MXU N=256)
MAX_TILE = 8192  # cap on batch_tile; VMEM stays < 1 MiB even double-buffered

# Packed-parameter layout (64 rows x 128 lanes, f32):
#   rows  0:16 -> W1 (16,2) in cols 0:2, b1 in col 2
#   rows 16:32 -> W2 (16,16) in cols 0:16, b2 in col 16
#   rows 32:48 -> W3 (16,16) in cols 0:16, b3 in col 16
#   rows 48:64 -> W4^T (16,1) in col 0,   b4 scalar at [48, 1]


def mlp_kernel(x_ref, p_ref, o_ref, *, act_dtype=jnp.float32):
    # Hoisted, loop-invariant parameter loads & broadcasts. Doing these inside
    # the loop would re-emit each broadcast_in_dim n_sub times (no CSE).
    w1a = jnp.broadcast_to(p_ref[0:16, 0:1], (16, SUB)).astype(act_dtype)
    w1b = jnp.broadcast_to(p_ref[0:16, 1:2], (16, SUB)).astype(act_dtype)
    b1 = jnp.broadcast_to(p_ref[0:16, 2:3], (16, SUB)).astype(act_dtype)
    w2 = p_ref[16:32, 0:16].astype(act_dtype)
    b2 = jnp.broadcast_to(p_ref[16:32, 16:17], (16, SUB)).astype(act_dtype)
    w3 = p_ref[32:48, 0:16].astype(act_dtype)
    b3 = jnp.broadcast_to(p_ref[32:48, 16:17], (16, SUB)).astype(act_dtype)
    w4 = jnp.broadcast_to(p_ref[48:64, 0:1], (16, SUB)).astype(act_dtype)
    b4 = jnp.broadcast_to(p_ref[48:49, 1:2], (1, SUB))  # stays f32 (output dtype)

    n_sub = x_ref.shape[1] // SUB  # static: batch_tile // SUB

    def body(j, carry):
        lo = pl.multiple_of(j * SUB, SUB)
        xt = x_ref[:, pl.ds(lo, SUB)].astype(act_dtype)            # (2, SUB)

        # Layer 1 (in=2): pure VPU broadcast mul-adds; MXU would be ~1% used.
        h = jnp.tanh(w1a * xt[0:1, :] + w1b * xt[1:2, :] + b1)      # (16, SUB)

        # Layers 2, 3: 16x16 matmuls on the MXU, lane-dense N=SUB, f32 accum.
        h = jnp.tanh(
            jnp.dot(w2, h, preferred_element_type=jnp.float32).astype(act_dtype)
            + b2)
        h = jnp.tanh(
            jnp.dot(w3, h, preferred_element_type=jnp.float32).astype(act_dtype)
            + b3)

        # Layer 4 (out=1): weighted sum over 16 sublanes (XLU reduce, free slot).
        o_ref[:, pl.ds(lo, SUB)] = (
            jnp.sum((w4 * h).astype(jnp.float32), axis=0, keepdims=True) + b4)
        return carry

    # Bounded loop with modest unroll: keeps scheduler visibility without the
    # code bloat / unbounded live ranges of a fully-unrolled Python loop.
    lax.fori_loop(0, n_sub, body, 0, unroll=min(4, n_sub))


def pack_params(params):
    """Pack the 4 (W, b) pairs of the 2->16->16->16->1 MLP into one (64,128)."""
    (w1, b1), (w2, b2), (w3, b3), (w4, b4) = params
    assert w1.shape == (16, 2) and w2.shape == (16, 16)
    assert w3.shape == (16, 16) and w4.shape == (1, 16)
    p = jnp.zeros((64, 128), jnp.float32)
    p = p.at[0:16, 0:2].set(w1.astype(jnp.float32))
    p = p.at[0:16, 2].set(b1.astype(jnp.float32))
    p = p.at[16:32, 0:16].set(w2.astype(jnp.float32))
    p = p.at[16:32, 16].set(b2.astype(jnp.float32))
    p = p.at[32:48, 0:16].set(w3.astype(jnp.float32))
    p = p.at[32:48, 16].set(b3.astype(jnp.float32))
    p = p.at[48:64, 0:1].set(w4.astype(jnp.float32).T)
    p = p.at[48, 1].set(b4.astype(jnp.float32)[0])
    return p


def _pick_batch_tile(B):
    # Large tiles amortize the ~0.35 us per-grid-step overhead; cap so that
    # the grid keeps >= 2 "parallel" steps once B is large enough so v7x
    # megacore can shard the batch across both TensorCores.
    tile = SUB * pl.cdiv(B, 2 * SUB)
    return int(max(SUB, min(MAX_TILE, tile)))


def mlp_forward(x, params, *, batch_tile=None, act_dtype=jnp.float32,
                x_transposed=False):
    """Fused MLP forward.

    x: (B, 2) f32, or (2, B) if x_transposed=True (skips the wrapper-side
       transpose and its extra HBM pass entirely).
    params: [(W(out,in), b(out,))]*4 for 2 -> 16 -> 16 -> 16 -> 1.
    act_dtype: jnp.float32 (default, bit-accurate to ~1e-6) or jnp.bfloat16
       (v6e/v7x EUP-bound speedup, relaxed accuracy).
    Returns (B, 1) f32, matching the PyTorch Linear/Tanh stack.
    """
    if x_transposed:
        xt = jnp.asarray(x, jnp.float32)
        in_dim, B = xt.shape
    else:
        B, in_dim = x.shape
        # Single transpose to (features, batch); no explicit zero-pad — Pallas
        # masks the ragged final block (padded lanes never mix across lanes
        # and their outputs are never written back).
        xt = jnp.asarray(x, jnp.float32).T
    assert in_dim == 2, "kernel is specialized to input_size=2"

    if batch_tile is None:
        batch_tile = _pick_batch_tile(B)
    assert batch_tile % SUB == 0 and batch_tile >= SUB
    num_tiles = pl.cdiv(B, batch_tile)

    packed = pack_params(params)
    kernel = functools.partial(mlp_kernel, act_dtype=act_dtype)

    out_t = pl.pallas_call(
        kernel,
        out_shape=jax.ShapeDtypeStruct((1, B), jnp.float32),
        grid=(num_tiles,),
        in_specs=[
            pl.BlockSpec((in_dim, batch_tile), lambda i: (0, i)),
            # single packed weight array, replicated across all grid steps
            pl.BlockSpec((64, 128), lambda i: (0, 0)),
        ],
        out_specs=pl.BlockSpec((1, batch_tile), lambda i: (0, i)),
        compiler_params=pltpu.CompilerParams(
            dimension_semantics=("parallel",)),
    )(xt, packed)

    return out_t.T  # (B, 1)


def init_params(key, input_size, layers_data):
    """Deterministic init matching nn.Linear shapes: W (out, in), b (out,)."""
    params = []
    fan_in = input_size
    for (size, _act) in layers_data:
        key, kw, kb = jax.random.split(key, 3)
        bound = 1.0 / jnp.sqrt(fan_in)
        w = jax.random.uniform(kw, (size, fan_in), jnp.float32, -bound, bound)
        b = jax.random.uniform(kb, (size,), jnp.float32, -bound, bound)
        params.append((w, b))
        fan_in = size
    return params


def mlp_reference(x, params):
    """Plain-JAX reference mirroring the PyTorch forward (Linear + Tanh stack)."""
    h = x
    n = len(params)
    for idx, (w, b) in enumerate(params):
        h = h @ w.T + b
        if idx < n - 1:           # last layer has activation=None
            h = jnp.tanh(h)
    return h


if __name__ == "__main__":
    key = jax.random.PRNGKey(0)

    input_size = 2                               # X_train.shape[1] in the script
    layers_data = [(16, "tanh"), (16, "tanh"), (16, "tanh"), (1, None)]
    # TODO(synk): kernel is specialized to this standard MLP_control topology
    # (tanh hidden layers); arbitrary activation Modules are not handled here.
    params = init_params(key, input_size, layers_data)

    # Two small deterministic batches: one ragged single-sub-block tile, one
    # exercising multiple sub-blocks per tile + a 2-step "parallel" grid.
    for batch in (300, 3000):
        key, kx = jax.random.split(key)
        x = jax.random.normal(kx, (batch, input_size), jnp.float32)

        out = jax.block_until_ready(mlp_forward(x, params))
        ref = mlp_reference(x, params)

        assert out.shape == (batch, 1)
        max_err = float(jnp.max(jnp.abs(out - ref)))
        assert jnp.allclose(out, ref, atol=1e-4, rtol=1e-4), max_err

    print("KERNEL_OK")
</pallas_src>

<mosaic_0001>
module attributes {stable_mosaic.version = 11 : i64} {
  func.func @mlp_kernel(%arg0: i32, %arg1: memref<2x256xf32, #tpu.memory_space<vmem>>, %arg2: memref<64x128xf32, #tpu.memory_space<vmem>>, %arg3: memref<1x256xf32, #tpu.memory_space<vmem>>) attributes {dimension_semantics = [#tpu.dimension_semantics<parallel>], iteration_bounds = array<i64: 2>, scalar_prefetch = 0 : i64, scratch_operands = 0 : i64, tpu.core_type = #tpu.core_type<tc>, window_params = [{transform_indices = @transform_0, window_bounds = array<i64: 2, 256>}, {pipeline_mode = #tpu.pipeline_mode<synchronous>, transform_indices = @transform_1, window_bounds = array<i64: 64, 128>}, {transform_indices = @transform_2, window_bounds = array<i64: 1, 256>}]} {
    %c0 = arith.constant 0 : index
    %c0_0 = arith.constant 0 : index
    %0 = vector.load %arg2[%c0, %c0_0] : memref<64x128xf32, #tpu.memory_space<vmem>>, vector<16x1xf32>
    %1 = vector.shape_cast %0 : vector<16x1xf32> to vector<16x1xf32>
    %2 = vector.broadcast %1 : vector<16x1xf32> to vector<16x256xf32>
    %c0_1 = arith.constant 0 : index
    %c1 = arith.constant 1 : index
    %3 = vector.load %arg2[%c0_1, %c1] : memref<64x128xf32, #tpu.memory_space<vmem>>, vector<16x1xf32>
    %4 = vector.shape_cast %3 : vector<16x1xf32> to vector<16x1xf32>
    %5 = vector.broadcast %4 : vector<16x1xf32> to vector<16x256xf32>
    %c0_2 = arith.constant 0 : index
    %c2 = arith.constant 2 : index
    %6 = vector.load %arg2[%c0_2, %c2] : memref<64x128xf32, #tpu.memory_space<vmem>>, vector<16x1xf32>
    %7 = vector.shape_cast %6 : vector<16x1xf32> to vector<16x1xf32>
    %8 = vector.broadcast %7 : vector<16x1xf32> to vector<16x256xf32>
    %c16 = arith.constant 16 : index
    %c0_3 = arith.constant 0 : index
    %9 = vector.load %arg2[%c16, %c0_3] : memref<64x128xf32, #tpu.memory_space<vmem>>, vector<16x16xf32>
    %c16_4 = arith.constant 16 : index
    %c16_5 = arith.constant 16 : index
    %10 = vector.load %arg2[%c16_4, %c16_5] : memref<64x128xf32, #tpu.memory_space<vmem>>, vector<16x1xf32>
    %11 = vector.shape_cast %10 : vector<16x1xf32> to vector<16x1xf32>
    %12 = vector.broadcast %11 : vector<16x1xf32> to vector<16x256xf32>
    %c32 = arith.constant 32 : index
    %c0_6 = arith.constant 0 : index
    %13 = vector.load %arg2[%c32, %c0_6] : memref<64x128xf32, #tpu.memory_space<vmem>>, vector<16x16xf32>
    %c32_7 = arith.constant 32 : index
    %c16_8 = arith.constant 16 : index
    %14 = vector.load %arg2[%c32_7, %c16_8] : memref<64x128xf32, #tpu.memory_space<vmem>>, vector<16x1xf32>
    %15 = vector.shape_cast %14 : vector<16x1xf32> to vector<16x1xf32>
    %16 = vector.broadcast %15 : vector<16x1xf32> to vector<16x256xf32>
    %c48 = arith.constant 48 : index
    %c0_9 = arith.constant 0 : index
    %17 = vector.load %arg2[%c48, %c0_9] : memref<64x128xf32, #tpu.memory_space<vmem>>, vector<16x1xf32>
    %18 = vector.shape_cast %17 : vector<16x1xf32> to vector<16x1xf32>
    %19 = vector.broadcast %18 : vector<16x1xf32> to vector<16x256xf32>
    %c48_10 = arith.constant 48 : index
    %c1_11 = arith.constant 1 : index
    %20 = vector.load %arg2[%c48_10, %c1_11] : memref<64x128xf32, #tpu.memory_space<vmem>>, vector<1x1xf32>
    %21 = vector.shape_cast %20 : vector<1x1xf32> to vector<1x1xf32>
    %22 = vector.broadcast %21 : vector<1x1xf32> to vector<1x256xf32>
    %c0_i32 = arith.constant 0 : i32
    %c256_i32 = arith.constant 256 : i32
    %23 = arith.muli %c0_i32, %c256_i32 : i32
    %24 = tpu.assume_multiple %23, 256 : i32
    %c0_12 = arith.constant 0 : index
    %25 = arith.index_cast %24 : i32 to index
    %26 = vector.load %arg1[%c0_12, %25] : memref<2x256xf32, #tpu.memory_space<vmem>>, vector<2x256xf32>
    %27 = vector.extract_strided_slice %26 {offsets = [0, 0], sizes = [1, 256], strides = [1, 1]} : vector<2x256xf32> to vector<1x256xf32>
    %28 = vector.broadcast %27 : vector<1x256xf32> to vector<16x256xf32>
    %29 = arith.mulf %2, %28 : vector<16x256xf32>
    %30 = vector.extract_strided_slice %26 {offsets = [1, 0], sizes = [1, 256], strides = [1, 1]} : vector<2x256xf32> to vector<1x256xf32>
    %31 = vector.broadcast %30 : vector<1x256xf32> to vector<16x256xf32>
    %32 = arith.mulf %5, %31 : vector<16x256xf32>
    %33 = arith.addf %29, %32 : vector<16x256xf32>
    %34 = arith.addf %33, %8 : vector<16x256xf32>
    %35 = math.tanh %34 : vector<16x256xf32>
    %cst = arith.constant dense<0.000000e+00> : vector<16x256xf32>
    %36 = tpu.matmul %9, %35, %cst {dimension_numbers = #tpu.dot_dimension_numbers<[1], [0], [0], [1], [0, 0, 1, 1], [], []>} : vector<16x16xf32>, vector<16x256xf32>, vector<16x256xf32> -> vector<16x256xf32>
    %37 = arith.addf %36, %12 : vector<16x256xf32>
    %38 = math.tanh %37 : vector<16x256xf32>
    %cst_13 = arith.constant dense<0.000000e+00> : vector<16x256xf32>
    %39 = tpu.matmul %13, %38, %cst_13 {dimension_numbers = #tpu.dot_dimension_numbers<[1], [0], [0], [1], [0, 0, 1, 1], [], []>} : vector<16x16xf32>, vector<16x256xf32>, vector<16x256xf32> -> vector<16x256xf32>
    %40 = arith.addf %39, %16 : vector<16x256xf32>
    %41 = math.tanh %40 : vector<16x256xf32>
    %42 = arith.mulf %19, %41 : vector<16x256xf32>
    %cst_14 = arith.constant dense<0.000000e+00> : vector<256xf32>
    %43 = vector.multi_reduction <add>, %42, %cst_14 [0] : vector<16x256xf32> to vector<256xf32>
    %44 = vector.shape_cast %43 : vector<256xf32> to vector<1x256xf32>
    %45 = arith.addf %44, %22 : vector<1x256xf32>
    %c0_15 = arith.constant 0 : index
    %46 = arith.index_cast %24 : i32 to index
    %47 = vector.load %arg3[%c0_15, %46] : memref<1x256xf32, #tpu.memory_space<vmem>>, vector<1x256xf32>
    tpu.vector_store %arg3[%c0_15, %46], %45 {strides = array<i32>} : memref<1x256xf32, #tpu.memory_space<vmem>>, vector<1x256xf32>,
    %c1_i32 = arith.constant 1 : i32
    return
  }
  func.func @transform_0(%arg0: i32) -> (i32, i32) {
    %c0_i32 = arith.constant 0 : i32
    %c0_i32_0 = arith.constant 0 : i32
    return %c0_i32, %arg0 : i32, i32
  }
  func.func @transform_1(%arg0: i32) -> (i32, i32) {
    %c0_i32 = arith.constant 0 : i32
    %c0_i32_0 = arith.constant 0 : i32
    %c0_i32_1 = arith.constant 0 : i32
    return %c0_i32, %c0_i32_0 : i32, i32
  }
  func.func @transform_2(%arg0: i32) -> (i32, i32) {
    %c0_i32 = arith.constant 0 : i32
    %c0_i32_0 = arith.constant 0 : i32
    return %c0_i32, %arg0 : i32, i32
  }
}

</mosaic_0001>

<bundles_post_ra>
// kernel: tpu_custom_call.1
= control target key start
LH: loop header
LB: loop body
LE: loop exit
PB: predicated region body
PF: predicated region fallthrough
CT: control target
= control target key end

     0   :  { %7 = vsyncpa [#allocation3], 0  ;;  %s1032_s0 = inlined_call_operand.hbm [shape: f32[2,300], index: 0, kind: input, shape index: {}]   ;;  %s1033_s1 = inlined_call_operand.hbm [shape: f32[64,128], index: 1, kind: input, shape index: {}]   ;;  %s1034_s2 = inlined_call_operand.hbm [shape: f32[1,300], index: 2, kind: output, shape index: {}]  }
   0x1   :  { %9 = vsyncpa [#allocation3 + $0x1], 0 }
   0x2   :  { %10 = vsyncpa [#allocation6], 0 }
   0x3   :  { %11 = vsyncpa [#allocation4], 0 }
   0x4   :  { %13 = vsyncpa [#allocation4 + $0x1], 0  ;;  %s837_s9 = smov 0   ;;  %s839_s10 = smov 0  }
   0x5   :  { %s841_s11 = smov 0   ;;  %s843_s12 = smov 0  }
   0x6 LB: > { %s858_s13 = sadd.s32 4294967295, %s811_s12   ;;  %s540_s14 = sadd.s32 4294967294, %s811_s12   ;;  %s811_s12 = sphi %s843_s12, %s1052_s12   ;;  %s807_s11 = sphi %s841_s11, %s1051_s11   ;;  %s803_s10 = sphi %s839_s10, %s1050_s10   ;;  %s799_s9 = sphi %s837_s9, %s1049_s9  }
   0x7   : > { %s862_s15 = sadd.s32 1, %s811_s12   ;;  %s26_s16 = sadd.s32 1, %s807_s11 }
   0x8   : > { %s23_s17 = ssub.s32 %s811_s12, %s862_s15  ;;  %p33_p0 = scmp.ne.s32.totalorder %s807_s11, %s803_s10 }
   0x9   : > { %p24_p1 = scmp.eq.s32.totalorder %s23_s17, 0  ;;  %p34_p2 = scmp.eq.s32.totalorder %s811_s12, 0 }
   0xa   : > { %p39_p3 = scmp.ne.s32.totalorder %s803_s10, %s799_s9  ;;  %p1037_p4 = scmp.eq.s32.totalorder %s858_s13, 0 }
   0xb   : > { %s874_s18 = scalar_select %p24_p1, %s807_s11, %s26_s16  }
   0xc   : > { %p876_p5 = por %p34_p2, %p33_p0  ;;  %p882_p6 = por %p1037_p4, %p39_p3 }
   0xd   : > { %p84_p7 = scmp.eq.s32.totalorder %s858_s13, 1  ;;  %p90_p8 = scmp.eq.s32.totalorder %s540_s14, 1 }
   0xe   : > { %p541_p9 = scmp.ge.s32.totalorder %s811_s12, 1  ;;  %p97_p10 = scmp.lt.s32.totalorder %s811_s12, 3 }
   0xf   : > { %p889_p11 = por %p84_p7, %p33_p0  ;;  %p893_p12 = por %p90_p8, %p39_p3 }
  0x10   : > { %p897_p13 = pnand %p541_p9, %p97_p10  ;;  %s108_s26 = sshll.u32 %s1033_s1, 4  ;;  %s109_s26 = int_to_ptr.hbm [resolvable:$true] %s108_s26 }
  0x11   : > { %s1041_s22 = scalar_select %p893_p12, 1, 0 }
  0x12   : > { %p575_p1 = pneg %p897_p13  ;;  %s813_s27 = smov [#allocation5]  }
  0x13   : > { %s110_s28 = sshll.u32 %s813_s27, 4  ;;  %s814_s29 = smov 128   ;;  %s111_s28 = int_to_ptr.vmem [resolvable:$true] %s110_s28 }
  0x14   : > { %p576_p0 = pnand %p575_p1, %p1037_p4  ;;  %s815_s30 = smov 8  }
  0x15   : > { %p1035_p2 = scmp.ge.s32.totalorder %s811_s12, 2 }
  0x16   : > { %578 = dma.hbm_to_vmem [thread:$0]  (!%p576_p0), %s109_s26, 1024, %s111_s28, [#allocation6], %s814_s29, %s814_s29, %s815_s30  }
  0x17   : > { %120 = sbr.rel (%p1035_p2) target bundleno = 64 (0x40), region = 20 }
  0x1c   : > { %123 = sbr.rel (!%p876_p5) target bundleno = 64 (0x40), region = 24  ;;  %s124_s3 = sand.u32 (%p876_p5), 1, %s807_s11  }
  0x1d   : > { %s545_s4 = sshll.u32 (%p876_p5), %s811_s12, 1  ;;  %s544_s5 = sshll.u32 (%p876_p5), %s124_s3, 2 }
  0x1e   : > { %s130_s6 = ssub.s32 (%p876_p5), 3, %s545_s4  ;;  %s918_s16 = scalar_lea.sflag (%p876_p5), [#allocation3], %s124_s3 }
  0x1f   : > { %p131_p3 = scmp.lt.s32.totalorder (%p876_p5), %s130_s6, 2  ;;  %s128_s17 = scalar_lea.vmem (%p876_p5), [#allocation2], %s544_s5 }
  0x21   : > { %s1054_s6 = smov (!%p131_p3, %s130_s6), 2 }
  0x22   : > { %s546_s7 = sshll.u32 %s1054_s6, 1 }
  0x23   : > { %s134_s8 = ssub.s32 4, %s546_s7 }
  0x24   : > { %s135_s14 = sshll.u32 %s134_s8, 4 }
  0x25   : > { %136 = vsyncadd %s918_s16, %s135_s14  ;;  %p921_p5 = scmp.ne.s32.totalorder %s546_s7, 0  ;;  %s568_s24 = sshll.u32 %s811_s12, 2 }
  0x26   : > { %s139_s27 = scalar_lea.hbm %s1032_s0, %s568_s24  ;;  %s1036_s28 = sshll.u32 %s1054_s6, 5 }
  0x27   : > { %s142_s29 = sshll.u32 %s139_s27, 4  ;;  %s930_s30 = sshll.u32 %s128_s17, 4  ;;  %s143_s29 = int_to_ptr.hbm [resolvable:$true] %s142_s29  ;;  %s145_s30 = int_to_ptr.vmem [resolvable:$true] %s930_s30 }
  0x28   : > { %s691_s3 = sshra.s32 %s143_s29, 4  ;;  %s693_s4 = sshrl.u32 %s1036_s28, 4  ;;  %s692_s3 = int_to_ptr.hbm [resolvable:$true] %s691_s3 }
  0x29   : > { %s698_s5 = scalar_lea.hbm %s692_s3, %s693_s4  ;;  %s702_s14 = scalar_lea.hbm %s1032_s0, 6 }
  0x2a   : > { %p699_p7 = scmp.ne.s32.totalorder %s692_s3, %s698_s5  ;;  %p703_p10 = scmp.lt.s32.totalorder %s692_s3, %s1032_s0 }
  0x2b   : > { %p704_p1 = scmp.lt.s32.totalorder %s702_s14, %s698_s5 }
  0x2c   : > { %p700_p8 = pnand %p699_p7, %p921_p5 }
  0x2d   : > { %p705_p0 = por %p704_p1, %p703_p10 }
  0x2e   : > { %p701_p9 = pneg %p700_p8 }
  0x30   : > { %p706_p3 = pnand %p705_p0, %p701_p9 }
  0x32   : > { %709 = shalt.err (!%p706_p3)
}
  0x33   : > { %s710_s17 = sshra.s32 %s145_s30, 4  ;;  %s816_s27 = smov [#allocation2]   ;;  %s711_s17 = int_to_ptr.vmem [resolvable:$true] %s710_s17 }
  0x34   : > { %s717_s26 = scalar_lea.vmem %s711_s17, %s693_s4  ;;  %s721_s28 = scalar_lea.vmem %s816_s27, 8 }
  0x35   : > { %p718_p2 = scmp.ne.s32.totalorder %s711_s17, %s717_s26  ;;  %p723_p4 = scmp.lt.s32.totalorder %s721_s28, %s717_s26 }
  0x37   : > { %p719_p7 = pnand %p718_p2, %p921_p5 }
  0x39   : > { %p720_p8 = pneg %p719_p7 }
  0x3b   : > { %p725_p12 = pnand %p723_p4, %p720_p8 }
  0x3d   : > { %728 = shalt.err (!%p725_p12)
}
  0x3e   : > { %s1044_s3 = sshll.u32 %s1054_s6, 5 }
  0x3f   : > { %147 = dma.hbm_to_vmem [thread:$0]  (%p921_p5), %s143_s29, %s1044_s3, %s145_s30, %s918_s16  }
  0x40 PF: > { %153 = sbr.rel (%p897_p13) target bundleno = 562 (0x232), region = 28  ;;  %s953_s4 = sand.u32 (!%p897_p13), 1, %s803_s10  }
  0x41   : > { %s552_s28 = sshll.u32 (!%p897_p13), %s953_s4, 2  ;;  %s156_s5 = scalar_lea.sflag (!%p897_p13), [#allocation3], %s953_s4 }
  0x42   : > { %s159_s7 = scalar_lea.vmem (!%p897_p13), [#allocation2], %s552_s28 }
  0x45   : > { %786 = dma.done.wait (%p882_p6), %s156_s5, 64  }
  0x46   : > { %788 = vsyncadd (%p882_p6), %s156_s5, 4294967232  ;;  %p1045_p4 = scmp.eq.s32.totalorder %s858_s13, 0 }
  0x48   : > { %790 = dma.done.wait (%p1045_p4), [#allocation6], 1024   ;;  %p1046_p12 = pmov %p1045_p4 }
  0x49   : > { %v817_v0 = vmov 0   ;;  %v818_v1 = vmov 2   ;;  %v196_v2 = vld [vmem:[#allocation5 + $0x8] sm:$0xff]  ;;  %v195_v3 = vld [vmem:[#allocation5] sm:$0xff]  ;;  %v819_v4 = vmov 1   ;;  %v223_v17 = vld [vmem:[#allocation5 + $0x10] sm:$0xff] }
  0x4a   : > { %792 = vsyncadd (%p1046_p12), [#allocation6], 4294966272  ;;  %627 = vset.pattern.permute.xlu1 %v817_v0  ;;  %625 = vset.pattern.permute.xlu0 %v817_v0  ;;  %v265_v5 = vld [vmem:[%s159_s7] sm:$0xf]  ;;  %v820_v19 = vmov 16   ;;  %v236_v33 = vld [vmem:[#allocation5 + $0x28] sm:$0xff] }
  0x4b   : > { %629 = vset.pattern.permute.xlu2 %v818_v1  ;;  %204 = vperm.xlu0 %625, %v196_v2   ;;  %v267_v8 = vperm.slane %v265_v5, 0  ;;  %v268_v9 = vperm.slane %v265_v5, 2  ;;  %v277_v10 = vperm.slane %v265_v5, 1  ;;  %v278_v11 = vperm.slane %v265_v5, 3  ;;  %v224_v18 = vld [vmem:[#allocation5 + $0x18] sm:$0xff]  ;;  %v235_v44 = vld [vmem:[#allocation5 + $0x20] sm:$0xff] }
  0x4c   : > { %199 = vperm.xlu1 %627, %v195_v3   ;;  %220 = vperm.xlu2 %629, %v196_v2   ;;  %vm299_vm0 = vcmask 130048   ;;  %v248_v45 = vld [vmem:[#allocation5 + $0x38] sm:$0xff]  ;;  %v247_v46 = vld [vmem:[#allocation5 + $0x30] sm:$0xff]  ;;  %s554_s20 = sshll.u32 %s953_s4, 1  ;;  %vm431_vm1 = vcmask 1040384   ;;  %s440_s6 = scalar_lea.sflag [#allocation4], %s953_s4 }
  0x4d   : > { %v271_v13 = vperm.slane %v267_v8, 0  ;;  %v272_v14 = vperm.slane %v268_v9, 0  ;;  %v281_v15 = vperm.slane %v277_v10, 1  ;;  %v282_v16 = vperm.slane %v278_v11, 1  ;;  %v259_v49 = vld [vmem:[#allocation5 + $0x30] sm:$0x1] }
  0x4e   : > { %s185_s23 = scalar_lea.vmem [#allocation7], %s554_s20  ;;  %s564_s16 = sshll.u32 (%p889_p11), %s858_s13, 1 }
  0x4f   : > { %s448_s19 = ssub.s32 (%p889_p11), 3, %s564_s16 }
  0x50   : > { %p449_p6 = scmp.lt.s32.totalorder (%p889_p11), %s448_s19, 2 }
  0x53   : > { %626 = vset.pattern.permute.xlu0 %v819_v4 }
  0x54   : > { %628 = vset.pattern.permute.xlu1 %v819_v4  ;;  %212 = vperm.xlu0 %626, %v196_v2  }
  0x55   : > { %208 = vperm.xlu1 %628, %v195_v3   ;;  %216 = vperm.xlu2 %629, %v195_v3  }
  0x5c   : > { %632 = vset.pattern.permute.xlu0 %v820_v19 }
  0x5d   : > { %630 = vset.pattern.permute.xlu1 %v820_v19  ;;  %631 = vset.pattern.permute.xlu2 %v820_v19 }
  0x5e   : > { %232 = vperm.xlu1 %630, %v224_v18   ;;  %227 = vperm.xlu2 %631, %v223_v17  }
  0x5f   : > { %239 = vperm.xlu0 %632, %v235_v44  }
  0x66   : > { %244 = vperm.xlu1 %630, %v236_v33   ;;  %633 = vset.pattern.permute.xlu2 %v817_v0 }
  0x67   : > { %636 = vset.pattern.permute.xlu0 %v819_v4  ;;  %251 = vperm.xlu2 %633, %v247_v46  }
  0x6e   : > { %634 = vset.pattern.permute.xlu1 %v817_v0 }
  0x6f   : > { %256 = vperm.xlu1 %634, %v248_v45   ;;  %635 = vset.pattern.permute.xlu2 %v819_v4 }
  0x70   : > { %262 = vperm.xlu2 %635, %v259_v49  }
  0xa6   : > { %v221_v12 = vpop.permute.xlu2 %220 }
  0xaf   : > { %v217_v36 = vpop.permute.xlu2 %216 }
  0xb8   : > { %v228_v50 = vpop.permute.xlu2 %227 }
  0xbd   : > { %v205_v6 = vpop.permute.xlu0 %204 }
  0xbe   : > { %v200_v7 = vpop.permute.xlu1 %199  ;;  %v275_v20 = vmul.f32 %v271_v13, %v205_v6  ;;  %v276_v21 = vmul.f32 %v272_v14, %v205_v6 }
  0xbf   : > { %v273_v22 = vmul.f32 %v271_v13, %v200_v7  ;;  %v274_v29 = vmul.f32 %v272_v14, %v200_v7 }
  0xc1   : > { %v252_v11 = vpop.permute.xlu2 %251 }
  0xc6   : > { %v213_v23 = vpop.permute.xlu0 %212 }
  0xc7   : > { %v209_v24 = vpop.permute.xlu1 %208  ;;  %v285_v25 = vmul.f32 %v281_v15, %v213_v23  ;;  %v286_v26 = vmul.f32 %v282_v16, %v213_v23 }
  0xc8   : > { %v283_v27 = vmul.f32 %v281_v15, %v209_v24  ;;  %v284_v28 = vmul.f32 %v282_v16, %v209_v24 }
  0xc9   : > { %v289_v31 = vadd.f32 %v285_v25, %v275_v20  ;;  %v290_v32 = vadd.f32 %v286_v26, %v276_v21 }
  0xca   : > { %v287_v30 = vadd.f32 %v283_v27, %v273_v22  ;;  %v288_v34 = vadd.f32 %v284_v28, %v274_v29 }
  0xcb   : > { %v293_v35 = vadd.f32 %v289_v31, %v221_v12  ;;  %v294_v37 = vadd.f32 %v290_v32, %v221_v12  ;;  %v434_v31 = vlaneseq }
  0xcc   : > { %v291_v38 = vadd.f32 %v287_v30, %v217_v36  ;;  %v292_v39 = vadd.f32 %v288_v34, %v217_v36  ;;  %v263_v30 = vpop.permute.xlu2 %262 }
  0xcd   : > { %637 = vtanh.f32 %v293_v35  ;;  %vm436_vm2 = vcmp.lt.s32.totalorder %v434_v31, 256 }
  0xce   : > { %639 = vtanh.f32 %v294_v37 }
  0xcf   : > { %641 = vtanh.f32 %v291_v38 }
  0xd0   : > { %643 = vtanh.f32 %v292_v39  ;;  %v233_v51 = vpop.permute.xlu1 %232 }
  0xd1   : > { %v240_v0 = vpop.permute.xlu0 %239 }
  0xd3   : > { %v638_v40 = vpop.eup %637 }
  0xd4   : > { %v640_v41 = vpop.eup %639  ;;  %318 = vmatpush.msra.mxu0 %v638_v40 }
  0xd5   : > { %v642_v42 = vpop.eup %641  ;;  %341 = vmatpush.msra.mxu1 %v640_v41 }
  0xd6   : > { %v644_v43 = vpop.eup %643  ;;  %319 = vmatpush.msra.mxu0 %v642_v42 }
  0xd7   : > { %342 = vmatpush.msra.mxu1 %v644_v43  ;;  %555 = vmatmul.msk.f32.vlgmr.msra.gmra.mxu0 %vm299_vm0, %v223_v17 }
  0xd8   : > { %557 = vmatmul.msk.f32.vlgmr.msra.gmra.mxu1 %vm299_vm0, %v223_v17  ;;  %v245_v3 = vpop.permute.xlu1 %244 }
  0xdf   : > { %556 = vmatmul.msk.f32.gmra.mxu0 %vm299_vm0, %v224_v18 }
  0xe0   : > { %558 = vmatmul.msk.f32.gmra.mxu1 %vm299_vm0, %v224_v18 }
  0xe1   : > { %v257_v9 = vpop.permute.xlu1 %256 }
 0x154   : > { %v321_v47 = vpop.f32.mrf.mxu0 }
 0x155   : > { %v344_v48 = vpop.f32.mrf.mxu1  ;;  %v322_v53 = vadd.f32 %v321_v47, %v228_v50 }
 0x156   : > { %v345_v56 = vadd.f32 %v344_v48, %v228_v50 }
 0x15c   : > { %v324_v52 = vpop.f32.mrf.mxu0 }
 0x15d   : > { %v325_v54 = vadd.f32 %v324_v52, %v233_v51  ;;  %v347_v55 = vpop.f32.mrf.mxu1 }
 0x15e   : > { %v348_v57 = vadd.f32 %v347_v55, %v233_v51 }
 0x15f   : > { %645 = vtanh.f32 %v325_v54 }
 0x160   : > { %647 = vtanh.f32 %v348_v57 }
 0x161   : > { %649 = vtanh.f32 %v322_v53 }
 0x162   : > { %651 = vtanh.f32 %v345_v56 }
 0x165   : > { %v646_v58 = vpop.eup %645 }
 0x166   : > { %v648_v59 = vpop.eup %647  ;;  %372 = vmatpush.msra.mxu2 %v646_v58 }
 0x167   : > { %v650_v60 = vpop.eup %649  ;;  %395 = vmatpush.msra.mxu3 %v648_v59 }
 0x168   : > { %v652_v61 = vpop.eup %651  ;;  %373 = vmatpush.msra.mxu2 %v650_v60 }
 0x169   : > { %396 = vmatpush.msra.mxu3 %v652_v61  ;;  %559 = vmatmul.msk.f32.vlgmr.msra.gmra.mxu2 %vm299_vm0, %v235_v44 }
 0x16a   : > { %561 = vmatmul.msk.f32.vlgmr.msra.gmra.mxu3 %vm299_vm0, %v235_v44 }
 0x171   : > { %560 = vmatmul.msk.f32.gmra.mxu2 %vm299_vm0, %v236_v33 }
 0x172   : > { %562 = vmatmul.msk.f32.gmra.mxu3 %vm299_vm0, %v236_v33 }
 0x1ec   : > { %v375_v62 = vpop.f32.mrf.mxu2 }
 0x1ed   : > { %v398_v63 = vpop.f32.mrf.mxu3  ;;  %v376_v1 = vadd.f32 %v375_v62, %v240_v0 }
 0x1ee   : > { %v399_v2 = vadd.f32 %v398_v63, %v240_v0 }
 0x1ef   : > { %653 = vtanh.f32 %v376_v1 }
 0x1f0   : > { %655 = vtanh.f32 %v399_v2 }
 0x1f4   : > { %v378_v4 = vpop.f32.mrf.mxu2 }
 0x1f5   : > { %v379_v5 = vadd.f32 %v378_v4, %v245_v3  ;;  %v401_v6 = vpop.f32.mrf.mxu3  ;;  %v654_v8 = vpop.eup %653 }
 0x1f6   : > { %v402_v7 = vadd.f32 %v401_v6, %v245_v3  ;;  %v656_v10 = vpop.eup %655  ;;  %v408_v14 = vmul.f32 %v654_v8, %v252_v11 }
 0x1f7   : > { %657 = vtanh.f32 %v379_v5  ;;  %v409_v16 = vmul.f32 %v656_v10, %v252_v11 }
 0x1f8   : > { %659 = vtanh.f32 %v402_v7 }
 0x1fd   : > { %v658_v12 = vpop.eup %657 }
 0x1fe   : > { %v660_v13 = vpop.eup %659  ;;  %v410_v15 = vmul.f32 %v658_v12, %v257_v9 }
 0x1ff   : > { %v411_v17 = vmul.f32 %v660_v13, %v257_v9 }
 0x200   : > { %v412_v18 = vadd.f32 %v410_v15, %v408_v14 }
 0x201   : > { %v419_v19 = vadd.f32 %v411_v17, %v409_v16 }
 0x202   : > { %v413_v20 = vrot.slane %v412_v18, 4 }
 0x203   : > { %v420_v21 = vrot.slane %v419_v19, 4 }
 0x204   : > { %v414_v22 = vadd.f32 %v413_v20, %v412_v18 }
 0x205   : > { %v421_v23 = vadd.f32 %v420_v21, %v419_v19 }
 0x206   : > { %v415_v24 = vrot.slane %v414_v22, 2 }
 0x207   : > { %v422_v25 = vrot.slane %v421_v23, 2 }
 0x208   : > { %v416_v26 = vadd.f32 %v415_v24, %v414_v22 }
 0x209   : > { %v423_v27 = vadd.f32 %v422_v25, %v421_v23 }
 0x20a   : > { %v417_v28 = vrot.slane %v416_v26, 1 }
 0x20b   : > { %v424_v29 = vrot.slane %v423_v27, 1 }
 0x20c   : > { %v418_v32 = vadd.f32 %v417_v28, %v416_v26 }
 0x20d   : > { %v425_v33 = vadd.f32 %v424_v29, %v423_v27 }
 0x20e   : > { %v426_v35 = vadd.f32 %v418_v32, %v263_v30 }
 0x20f   : > { %v427_v34 = vadd.f32 %v425_v33, %v263_v30 }
 0x210   : > { %446 = sbr.rel (!%p889_p11) target bundleno = 562 (0x232), region = 40 }
 0x211   : > { %v430_v36 = vrot.slane %v427_v34, 7 }
 0x213   : > { %v432_v37 = vsel %vm431_vm1, %v426_v35, %v430_v36 }
 0x214   : > { %438 = vst.msk [vmem:[%s185_s23] sm:$0x3] %vm436_vm2, %v432_v37 }
 0x215   : > { %s1056_s19 = smov (!%p449_p6, %s448_s19), 2 }
 0x216   : > { %s451_s29 = ssub.s32 2, %s1056_s19 }
 0x217   : > { %s452_s30 = sshll.u32 %s451_s29, 4 }
 0x218   : > { %453 = vsyncadd %s440_s6, %s452_s30  ;;  %p565_p13 = scmp.ne.s32.totalorder %s1056_s19, 0  ;;  %s455_s14 = scalar_lea.hbm %s1034_s2, %s564_s16 }
 0x219   : > { %s456_s24 = sshll.u32 %s1056_s19, 4  ;;  %s457_s13 = sshll.u32 %s185_s23, 4  ;;  %s992_s13 = int_to_ptr.vmem [resolvable:$true] %s457_s13 }
 0x21a   : > { %s459_s25 = sshll.u32 %s455_s14, 4  ;;  %s730_s17 = sshra.s32 %s992_s13, 4  ;;  %s460_s25 = int_to_ptr.hbm [resolvable:$true] %s459_s25  ;;  %s731_s17 = int_to_ptr.vmem [resolvable:$true] %s730_s17 }
 0x21b   : > { %s732_s26 = sshrl.u32 %s456_s24, 4  ;;  %s821_s3 = smov [#allocation7]  }
 0x21c   : > { %s737_s27 = scalar_lea.vmem %s731_s17, %s732_s26  ;;  %s741_s28 = scalar_lea.vmem %s821_s3, 4 }
 0x21d   : > { %p738_p11 = scmp.ne.s32.totalorder %s731_s17, %s737_s27  ;;  %p743_p9 = scmp.lt.s32.totalorder %s741_s28, %s737_s27 }
 0x21f   : > { %p739_p2 = pnand %p738_p11, %p565_p13 }
 0x221   : > { %p740_p5 = pneg %p739_p2 }
 0x223   : > { %p745_p10 = pnand %p743_p9, %p740_p5 }
 0x225   : > { %748 = shalt.err (!%p745_p10)
}
 0x226   : > { %s749_s5 = sshra.s32 %s460_s25, 4  ;;  %s760_s16 = scalar_lea.hbm %s1034_s2, 3  ;;  %s750_s5 = int_to_ptr.hbm [resolvable:$true] %s749_s5 }
 0x227   : > { %s756_s7 = scalar_lea.hbm %s750_s5, %s732_s26  ;;  %p761_p7 = scmp.lt.s32.totalorder %s750_s5, %s1034_s2 }
 0x228   : > { %p757_p1 = scmp.ne.s32.totalorder %s750_s5, %s756_s7  ;;  %p762_p8 = scmp.lt.s32.totalorder %s760_s16, %s756_s7 }
 0x22a   : > { %p758_p0 = pnand %p757_p1, %p565_p13  ;;  %p763_p4 = por %p762_p8, %p761_p7 }
 0x22c   : > { %p759_p3 = pneg %p758_p0 }
 0x22e   : > { %p764_p12 = pnand %p763_p4, %p759_p3 }
 0x230   : > { %767 = shalt.err (!%p764_p12)
}
 0x231   : > { %462 = dma.vmem_to_hbm [thread:$0]  (%p565_p13), %s992_s13, %s456_s24, %s460_s25, %s440_s6  }
 0x232 PF: > { %s471_s8 = sand.u32 1, %s799_s9   ;;  %p1047_p6 = scmp.ne.s32.totalorder %s1041_s22, 0 }
 0x233   : > { %p1048_p11 = scmp.ge.s32.totalorder %s811_s12, 2  ;;  %s472_s21 = scalar_lea.sflag [#allocation4], %s471_s8 }
 0x235   : > { %p580_p2 = pnand %p1048_p11, %p1047_p6 }
 0x237   : > { %p581_p5 = pneg %p580_p2 }
 0x239   : > { %794 = dma.done.wait (%p581_p5), %s472_s21, 32  }
 0x23a   : > { %796 = vsyncadd (%p581_p5), %s472_s21, 4294967264  ;;  %p16_p9 = scmp.ge.s32.totalorder %s862_s15, 4   ;;  %s1049_s9 = smov %s803_s10 }
 0x23b   : > { %s1050_s10 = smov %s807_s11  ;;  %s1051_s11 = smov %s874_s18 }
 0x23c   : > { %s1052_s12 = smov %s862_s15  ;;  %18 = sbr.rel (!%p16_p9) target bundleno = 6 (0x6), region = 77 }
 0x241   :  { %478 = vsyncpa [#allocation3], 1 }
 0x242   :  { %480 = vsyncpa [#allocation3 + $0x1], 1 }
 0x243   :  { %481 = vsyncpa [#allocation6], 1 }
 0x244   :  { %482 = vsyncpa [#allocation4], 1 }
 0x245   :  { %484 = vsyncpa [#allocation4 + $0x1], 1 }

</bundles_post_ra>
